<compile_context>
chip_gen: v6e
topology: v6e:2x2x1
jax: 0.10.0
libtpu: 0.0.40
codegen_flags: <defaults>
</compile_context>

<pallas_src>
import functools

import jax
import jax.numpy as jnp
from jax.experimental import pallas as pl
from jax.experimental.pallas import tpu as pltpu


def _round_up(x: int, m: int) -> int:
    return ((x + m - 1) // m) * m


def prompt_mlp_kernel(x_ref, w1_ref, w2_ref, o_ref, h_ref):
    # x_ref:  (tile_m, in_pad)   bf16
    # w1_ref: (in_pad, hid_pad)  bf16  (resident: constant index_map)
    # w2_ref: (hid_pad, tile_n)  bf16
    # o_ref:  (tile_m, tile_n)   out dtype (lane-dense: tile_n % 256 == 0)
    # h_ref:  (tile_m, hid_pad)  bf16 VMEM scratch (cached hidden activations)

    # Hidden activations depend only on the batch tile -> compute once per
    # batch tile (first N step) and reuse for every output-N tile.
    @pl.when(pl.program_id(1) == 0)
    def _():
        h = jnp.dot(x_ref[...], w1_ref[...], preferred_element_type=jnp.float32)
        h = jnp.maximum(h, 0.0)              # ReLU in f32 on the accumulator
        h_ref[...] = h.astype(h_ref.dtype)   # bf16 for the second MXU matmul

    out = jnp.dot(h_ref[...], w2_ref[...], preferred_element_type=jnp.float32)
    o_ref[...] = out.astype(o_ref.dtype)


@functools.partial(jax.jit, static_argnames=("length", "out_features"))
def prompt_mlp_forward(x, w1, w2, *, length, out_features):
    """x: (bsz, in_features); w1: (in, hidden); w2: (hidden, out*length).

    Weights are stored pre-transposed w.r.t. nn.Linear's (out, in) layout so the
    kernel does plain row-major matmuls: relu(x @ w1) @ w2.
    """
    bsz, in_features = x.shape
    hidden_features = w1.shape[1]
    flat_out = w2.shape[1]
    assert flat_out == out_features * length
    out_dtype = x.dtype
    compute_dtype = jnp.bfloat16

    # --- Pad to MXU / lane friendly shapes (zeros are exact for this network).
    in_pad = _round_up(in_features, 128)
    hid_pad = _round_up(hidden_features, 128)
    flat_pad = _round_up(flat_out, 256)          # lane-dense output, 256-wide MXU

    tile_m = min(256, _round_up(bsz, 8))
    b_pad = _round_up(bsz, tile_m)
    tile_n = min(512, flat_pad)
    if flat_pad % tile_n:
        tile_n = 256

    xp = jnp.zeros((b_pad, in_pad), compute_dtype).at[
        :bsz, :in_features].set(x.astype(compute_dtype))
    w1p = jnp.zeros((in_pad, hid_pad), compute_dtype).at[
        :in_features, :hidden_features].set(w1.astype(compute_dtype))
    w2p = jnp.zeros((hid_pad, flat_pad), compute_dtype).at[
        :hidden_features, :flat_out].set(w2.astype(compute_dtype))

    grid = (b_pad // tile_m, flat_pad // tile_n)

    # Cost hint for XLA's scheduler (two GEMMs + bytes moved).
    out_bytes = jnp.dtype(out_dtype).itemsize
    flops = 2 * b_pad * in_pad * hid_pad + 2 * b_pad * hid_pad * flat_pad
    bytes_accessed = (xp.size + w1p.size + w2p.size) * 2 + b_pad * flat_pad * out_bytes

    # Per-block VMEM working set (double-buffered inputs/outputs + scratch).
    vmem_est = (
        2 * tile_m * in_pad * 2            # x blocks (bf16, 2 buffers)
        + 2 * in_pad * hid_pad * 2         # w1 (resident; 2x for headroom)
        + 2 * hid_pad * tile_n * 2         # w2 blocks
        + 2 * tile_m * tile_n * out_bytes  # out blocks
        + tile_m * hid_pad * 2             # hidden scratch
    )
    vmem_limit = int(min(max(3 * vmem_est, 16 * 1024 * 1024), 48 * 1024 * 1024))

    out_flat = pl.pallas_call(
        prompt_mlp_kernel,
        out_shape=jax.ShapeDtypeStruct((b_pad, flat_pad), out_dtype),
        grid=grid,
        in_specs=[
            pl.BlockSpec((tile_m, in_pad), lambda i, j: (i, 0)),
            pl.BlockSpec((in_pad, hid_pad), lambda i, j: (0, 0)),
            pl.BlockSpec((hid_pad, tile_n), lambda i, j: (0, j)),
        ],
        out_specs=pl.BlockSpec((tile_m, tile_n), lambda i, j: (i, j)),
        scratch_shapes=[pltpu.VMEM((tile_m, hid_pad), compute_dtype)],
        compiler_params=pltpu.CompilerParams(
            dimension_semantics=("parallel", "arbitrary"),
            vmem_limit_bytes=vmem_limit,
        ),
        cost_estimate=pl.CostEstimate(
            flops=flops, transcendentals=0, bytes_accessed=bytes_accessed),
    )(xp, w1p, w2p)

    # Glue: strip padding and reshape to (bsz, length, out_features).
    return out_flat[:bsz, :flat_out].reshape(bsz, length, out_features)


def init_prompt_mlp_params(key, in_features, hidden_features, out_features, length,
                           dtype=jnp.float32):
    """Deterministic synthetic init (PyTorch Linear default is uniform Kaiming-style)."""
    k1, k2 = jax.random.split(key)
    bound1 = 1.0 / (in_features ** 0.5)
    bound2 = 1.0 / (hidden_features ** 0.5)
    # Stored pre-transposed relative to nn.Linear's (out, in) layout.
    w1 = jax.random.uniform(k1, (in_features, hidden_features),
                            minval=-bound1, maxval=bound1, dtype=dtype)
    w2 = jax.random.uniform(k2, (hidden_features, out_features * length),
                            minval=-bound2, maxval=bound2, dtype=dtype)
    return w1, w2


def reference_forward_f32(x, w1, w2, length, out_features):
    h = jnp.maximum(x @ w1, 0.0)
    return (h @ w2).reshape(x.shape[0], length, out_features)


def reference_forward_bf16(x, w1, w2, length, out_features):
    """Emulates the kernel's bf16-operand / f32-accumulate math path."""
    xb = x.astype(jnp.bfloat16)
    w1b = w1.astype(jnp.bfloat16)
    w2b = w2.astype(jnp.bfloat16)
    h = jnp.maximum(jnp.dot(xb, w1b, preferred_element_type=jnp.float32), 0.0)
    out = jnp.dot(h.astype(jnp.bfloat16), w2b, preferred_element_type=jnp.float32)
    return out.astype(x.dtype).reshape(x.shape[0], length, out_features)


if __name__ == "__main__":
    # Small shapes consistent with PromptMLP defaults:
    #   hidden_features=8, length=4; pick in_features=32, out_features=16, bsz=8.
    bsz = 8
    in_features = 32
    hidden_features = 8
    out_features = 16
    length = 4

    key = jax.random.PRNGKey(0)
    kx, kp = jax.random.split(key)
    x = jax.random.normal(kx, (bsz, in_features), dtype=jnp.float32)
    w1, w2 = init_prompt_mlp_params(kp, in_features, hidden_features,
                                    out_features, length)

    out = prompt_mlp_forward(x, w1, w2, length=length, out_features=out_features)
    out = jax.block_until_ready(out)
    assert out.shape == (bsz, length, out_features), out.shape

    # Tight check against a reference that mirrors the bf16/f32 math path.
    ref_bf16 = reference_forward_bf16(x, w1, w2, length, out_features)
    assert jnp.allclose(out, ref_bf16, atol=2e-3, rtol=2e-3), "mismatch vs bf16 reference"

    # Loose check against the pure-f32 PyTorch-equivalent math.
    ref_f32 = reference_forward_f32(x, w1, w2, length, out_features)
    assert jnp.allclose(out, ref_f32, atol=5e-2, rtol=5e-2), "mismatch vs f32 reference"

    # TODO(synk): dropout forward hook is a no-op here (dropout defaults to 0.0,
    # inference path); only the default ReLU activation variant is implemented.
    print("KERNEL_OK")
</pallas_src>

<mosaic_0001>
module attributes {stable_mosaic.version = 11 : i64} {
  func.func @prompt_mlp_kernel(%arg0: i32, %arg1: i32, %arg2: memref<8x128xbf16, #tpu.memory_space<vmem>>, %arg3: memref<128x128xbf16, #tpu.memory_space<vmem>>, %arg4: memref<128x256xbf16, #tpu.memory_space<vmem>>, %arg5: memref<8x256xf32, #tpu.memory_space<vmem>>, %arg6: memref<8x128xbf16, #tpu.memory_space<vmem>>) attributes {dimension_semantics = [#tpu.dimension_semantics<parallel>, #tpu.dimension_semantics<arbitrary>], iteration_bounds = array<i64: 1, 1>, scalar_prefetch = 0 : i64, scratch_operands = 1 : i64, tpu.core_type = #tpu.core_type<tc>, window_params = [{transform_indices = @transform_0, window_bounds = array<i64: 8, 128>}, {pipeline_mode = #tpu.pipeline_mode<synchronous>, transform_indices = @transform_1, window_bounds = array<i64: 128, 128>}, {transform_indices = @transform_2, window_bounds = array<i64: 128, 256>}, {transform_indices = @transform_3, window_bounds = array<i64: 8, 256>}]} {
    %c0_i32 = arith.constant 0 : i32
    %0 = arith.cmpi eq, %arg1, %c0_i32 : i32
    %1 = arith.extui %0 : i1 to i32
    %c0_i32_0 = arith.constant 0 : i32
    %2 = arith.cmpi ne, %1, %c0_i32_0 : i32
    scf.if %2 {
      %c0_6 = arith.constant 0 : index
      %c0_7 = arith.constant 0 : index
      %7 = vector.load %arg2[%c0_6, %c0_7] : memref<8x128xbf16, #tpu.memory_space<vmem>>, vector<8x128xbf16>
      %c0_8 = arith.constant 0 : index
      %c0_9 = arith.constant 0 : index
      %8 = vector.load %arg3[%c0_8, %c0_9] : memref<128x128xbf16, #tpu.memory_space<vmem>>, vector<128x128xbf16>
      %cst_10 = arith.constant dense<0.000000e+00> : vector<8x128xf32>
      %9 = tpu.matmul %7, %8, %cst_10 {dimension_numbers = #tpu.dot_dimension_numbers<[1], [0], [0], [1], [0, 0, 1, 1], [], []>} : vector<8x128xbf16>, vector<128x128xbf16>, vector<8x128xf32> -> vector<8x128xf32>
      %cst_11 = arith.constant 0.000000e+00 : f32
      %10 = vector.broadcast %cst_11 : f32 to vector<8x128xf32>
      %11 = arith.maximumf %9, %10 : vector<8x128xf32>
      %12 = arith.truncf %11 : vector<8x128xf32> to vector<8x128xbf16>
      %c0_12 = arith.constant 0 : index
      %c0_13 = arith.constant 0 : index
      %13 = vector.load %arg6[%c0_12, %c0_13] : memref<8x128xbf16, #tpu.memory_space<vmem>>, vector<8x128xbf16>
      tpu.vector_store %arg6[%c0_12, %c0_13], %12 {strides = array<i32>} : memref<8x128xbf16, #tpu.memory_space<vmem>>, vector<8x128xbf16>,
    } else {
    }
    %c0 = arith.constant 0 : index
    %c0_1 = arith.constant 0 : index
    %3 = vector.load %arg6[%c0, %c0_1] : memref<8x128xbf16, #tpu.memory_space<vmem>>, vector<8x128xbf16>
    %c0_2 = arith.constant 0 : index
    %c0_3 = arith.constant 0 : index
    %4 = vector.load %arg4[%c0_2, %c0_3] : memref<128x256xbf16, #tpu.memory_space<vmem>>, vector<128x256xbf16>
    %cst = arith.constant dense<0.000000e+00> : vector<8x256xf32>
    %5 = tpu.matmul %3, %4, %cst {dimension_numbers = #tpu.dot_dimension_numbers<[1], [0], [0], [1], [0, 0, 1, 1], [], []>} : vector<8x128xbf16>, vector<128x256xbf16>, vector<8x256xf32> -> vector<8x256xf32>
    %c0_4 = arith.constant 0 : index
    %c0_5 = arith.constant 0 : index
    %6 = vector.load %arg5[%c0_4, %c0_5] : memref<8x256xf32, #tpu.memory_space<vmem>>, vector<8x256xf32>
    tpu.vector_store %arg5[%c0_4, %c0_5], %5 {strides = array<i32>} : memref<8x256xf32, #tpu.memory_space<vmem>>, vector<8x256xf32>,
    return
  }
  func.func @transform_0(%arg0: i32, %arg1: i32) -> (i32, i32) {
    %c0_i32 = arith.constant 0 : i32
    %c0_i32_0 = arith.constant 0 : i32
    return %arg0, %c0_i32 : i32, i32
  }
  func.func @transform_1(%arg0: i32, %arg1: i32) -> (i32, i32) {
    %c0_i32 = arith.constant 0 : i32
    %c0_i32_0 = arith.constant 0 : i32
    %c0_i32_1 = arith.constant 0 : i32
    return %c0_i32, %c0_i32_0 : i32, i32
  }
  func.func @transform_2(%arg0: i32, %arg1: i32) -> (i32, i32) {
    %c0_i32 = arith.constant 0 : i32
    %c0_i32_0 = arith.constant 0 : i32
    return %c0_i32, %arg1 : i32, i32
  }
  func.func @transform_3(%arg0: i32, %arg1: i32) -> (i32, i32) {
    %c0_i32 = arith.constant 0 : i32
    return %arg0, %arg1 : i32, i32
  }
}

</mosaic_0001>

<bundles_post_ra>
// kernel: prompt_mlp_forward.1
= control target key start
LH: loop header
LB: loop body
LE: loop exit
PB: predicated region body
PF: predicated region fallthrough
CT: control target
= control target key end

     0   :  { %v359_v0 = vmov 0.0   ;;  %vm360_vm0 = vmmov 0   ;;  %v361_v26 = vmov 0   ;;  %s463_s1 = inlined_call_operand.vmem [shape: bf16[128,128], index: 1, kind: input, shape index: {}]   ;;  %s464_s2 = inlined_call_operand.vmem [shape: bf16[128,256], index: 2, kind: input, shape index: {}]   ;;  %s465_s0 = inlined_call_operand.vmem [shape: bf16[8,128], index: 0, kind: input, shape index: {}]   ;;  %s466_s3 = inlined_call_operand.vmem [shape: f32[8,256], index: 3, kind: output, shape index: {}]  }
   0x1   :  { %304 = vmatprep.subr.bf16.mxu0 %v359_v0  ;;  %v327_v1 = vld [vmem:[%s463_s1 + $0x38] sm:$0xff]   ;;  %320 = vmatprep.mubr.msk.bf16.mxu0 %vm360_vm0, %v359_v0  ;;  %v328_v2 = vld [vmem:[%s463_s1 + $0x30] sm:$0xff]   ;;  %v329_v3 = vld [vmem:[%s463_s1 + $0x28] sm:$0xff]  }
   0x2   :  { %305 = vmatpush3.bf16.msra.mxu0 %v327_v1  ;;  %v335_v4 = vld [vmem:[%s464_s2 + $0x74] ss:$8 sps:$4 sm:$0xff]   ;;  %v337_v5 = vld [vmem:[%s464_s2 + $0x70] ss:$8 sps:$4 sm:$0xff]   ;;  %v330_v6 = vld [vmem:[%s463_s1 + $0x20] sm:$0xff]   ;;  %256 = vmatprep.mubr.bf16.mxu1 %v361_v26 }
   0x3   :  { %306 = vmatprep.subr.bf16.mxu0 %v359_v0  ;;  %v338_v7 = vld [vmem:[%s464_s2 + $0x64] ss:$8 sps:$4 sm:$0xff]   ;;  %224 = vmatprep.subr.bf16.mxu1 %v335_v4  ;;  %v340_v8 = vld [vmem:[%s464_s2 + $0x60] ss:$8 sps:$4 sm:$0xff]   ;;  %v341_v9 = vld [vmem:[%s464_s2 + $0x54] ss:$8 sps:$4 sm:$0xff]  }
   0x4   :  { %225 = vmatpush1.bf16.msra.mxu1 %v337_v5  ;;  %v331_v10 = vld [vmem:[%s463_s1 + $0x18] sm:$0xff]   ;;  %v344_v12 = vld [vmem:[%s464_s2 + $0x44] ss:$8 sps:$4 sm:$0xff]   ;;  %v332_v13 = vld [vmem:[%s463_s1 + $0x10] sm:$0xff]  }
   0x5   :  { %226 = vmatprep.subr.bf16.mxu1 %v338_v7  ;;  %v343_v11 = vld [vmem:[%s464_s2 + $0x50] ss:$8 sps:$4 sm:$0xff]   ;;  %v346_v14 = vld [vmem:[%s464_s2 + $0x40] ss:$8 sps:$4 sm:$0xff]   ;;  %v347_v15 = vld [vmem:[%s464_s2 + $0x34] ss:$8 sps:$4 sm:$0xff]  }
   0x6   :  { %307 = vmatpush3.bf16.msra.mxu0 %v328_v2  ;;  %v333_v16 = vld [vmem:[%s463_s1 + $0x8] sm:$0xff]   ;;  %v349_v17 = vld [vmem:[%s464_s2 + $0x30] ss:$8 sps:$4 sm:$0xff]   ;;  %v334_v18 = vld [vmem:[%s463_s1] sm:$0xff]  }
   0x7   :  { %308 = vmatprep.subr.bf16.mxu0 %v359_v0  ;;  %v19_v19 = vld [vmem:[%s465_s0] sm:$0xf]  ;;  %v350_v20 = vld [vmem:[%s464_s2 + $0x24] ss:$8 sps:$4 sm:$0xff]   ;;  %v353_v22 = vld [vmem:[%s464_s2 + $0x14] ss:$8 sps:$4 sm:$0xff]  }
   0x8   :  { %227 = vmatpush1.bf16.msra.mxu1 %v340_v8  ;;  %v352_v21 = vld [vmem:[%s464_s2 + $0x20] ss:$8 sps:$4 sm:$0xff]   ;;  %v355_v23 = vld [vmem:[%s464_s2 + $0x10] ss:$8 sps:$4 sm:$0xff]   ;;  %v356_v24 = vld [vmem:[%s464_s2 + $0x4] ss:$8 sps:$4 sm:$0xff]  }
   0x9   :  { %228 = vmatprep.subr.bf16.mxu1 %v341_v9  ;;  %v358_v25 = vld [vmem:[%s464_s2] ss:$8 sps:$4 sm:$0xff]  }
   0xa   :  { %309 = vmatpush3.bf16.msra.mxu0 %v329_v3 }
   0xb   :  { %310 = vmatprep.subr.bf16.mxu0 %v359_v0 }
   0xc   :  { %229 = vmatpush1.bf16.msra.mxu1 %v343_v11 }
   0xd   :  { %230 = vmatprep.subr.bf16.mxu1 %v344_v12 }
   0xe   :  { %311 = vmatpush3.bf16.msra.mxu0 %v330_v6 }
   0xf   :  { %312 = vmatprep.subr.bf16.mxu0 %v359_v0 }
  0x10   :  { %231 = vmatpush1.bf16.msra.mxu1 %v346_v14 }
  0x11   :  { %232 = vmatprep.subr.bf16.mxu1 %v347_v15 }
  0x12   :  { %313 = vmatpush3.bf16.msra.mxu0 %v331_v10 }
  0x13   :  { %314 = vmatprep.subr.bf16.mxu0 %v359_v0 }
  0x14   :  { %233 = vmatpush1.bf16.msra.mxu1 %v349_v17 }
  0x15   :  { %234 = vmatprep.subr.bf16.mxu1 %v350_v20 }
  0x16   :  { %315 = vmatpush3.bf16.msra.mxu0 %v332_v13 }
  0x17   :  { %316 = vmatprep.subr.bf16.mxu0 %v359_v0 }
  0x18   :  { %235 = vmatpush1.bf16.msra.mxu1 %v352_v21 }
  0x19   :  { %236 = vmatprep.subr.bf16.mxu1 %v353_v22 }
  0x1a   :  { %317 = vmatpush3.bf16.msra.mxu0 %v333_v16 }
  0x1b   :  { %318 = vmatprep.subr.bf16.mxu0 %v359_v0 }
  0x1c   :  { %237 = vmatpush1.bf16.msra.mxu1 %v355_v23 }
  0x1d   :  { %238 = vmatprep.subr.bf16.mxu1 %v356_v24 }
  0x1e   :  { %319 = vmatpush3.bf16.msra.mxu0 %v334_v18 }
  0x20   :  { %239 = vmatpush1.bf16.msra.mxu1 %v358_v25 }
  0x21   :  { %321 = vmatmul.mubr.bf16.vlgmr.msra.gmra.mxu0 %v19_v19 }
  0xe1   :  { %v118_v27 = vpop.f32.mrf.mxu0 }
  0xe2   :  { %v124_v28 = vmax.f32 %v118_v27, 0.0 }
  0xe3   :  { %v322_v29 = vpop.f32.mrf.mxu0 }
  0xe4   :  { %v125_v30 = vpack.c.bf16 %v124_v28, %v124_v28 }
  0xe5   :  { %v121_v31 = vpop.f32.mrf.mxu0 }
  0xe6   :  { %126 = vst [vmem:[#allocation2] sm:$0xf] %v125_v30 }
  0xe7   :  { %v323_v32 = vpop.f32.mrf.mxu0 }
  0xed   :  { %v127_v33 = vld [vmem:[#allocation2] sm:$0xf] }
  0xee   :  { %257 = vmatmul.mubr.bf16.vlgmr.msra.gmra.mxu1 %v127_v33 }
 0x1ae   :  { %v258_v34 = vpop.f32.mrf.mxu1 }
 0x1af   :  { %265 = vst [vmem:[%s466_s3] sm:$0xff] %v258_v34 }
 0x1b0   :  { %v260_v35 = vpop.f32.mrf.mxu1 }
 0x1b1   :  { %266 = vst [vmem:[%s466_s3 + $0x8] sm:$0xff] %v260_v35 }
 0x1b2   :  { %v262_v36 = vpop.f32.mrf.mxu1 }
 0x1b4   :  { %v263_v37 = vpop.f32.mrf.mxu1 }

</bundles_post_ra>
